<compile_context>
chip_gen: v6e
topology: v6e:2x2x1
jax: 0.10.0
libtpu: 0.0.40
codegen_flags: <defaults>
</compile_context>

<pallas_src>
import functools

import jax
import jax.numpy as jnp
from jax.experimental import pallas as pl
from jax.experimental.pallas import tpu as pltpu


def _mlp_kernel(x_ref, w1_ref, b1_ref, w2_ref, b2_ref, o_ref):
    # In-kernel f32 -> bf16 cast of the streamed x tile (VPU work, hidden under
    # the DMA of the next tile / the MXU of this one).
    x = x_ref[...].astype(w1_ref.dtype)

    # Layer 1: bf16 MXU matmul with f32 accumulation; bias add + ReLU in f32.
    # (Note: a 128-wide contraction only half-fills the 256x256 MXU on v6e/v7x;
    #  that is the model's shape choice -- the large batch tile amortizes
    #  pipeline fill/drain, and this kernel is HBM-bound anyway.)
    h = jnp.dot(x, w1_ref[...], preferred_element_type=jnp.float32)
    h = jnp.maximum(h + b1_ref[...], 0.0)          # b1 is [1, hidden] -> broadcast

    # Layer 2: single f32 -> bf16 cast of the activation, bf16 MXU matmul,
    # f32 bias add.
    y = jnp.dot(h.astype(w2_ref.dtype), w2_ref[...],
                preferred_element_type=jnp.float32)
    y = y + b2_ref[...]                            # b2 is [1, out] -> broadcast

    # norm = nn.Identity()
    # TODO(synk): norm_layer='bn'/'dbn'/'sdbn' (BatchNorm1d / ShuffledGroupWhitening)
    # variants are not implemented; only the default norm_layer=None path is.
    o_ref[...] = y.astype(o_ref.dtype)


def _round_up8(v):
    return max(8, ((v + 7) // 8) * 8)


def _vmem_limit_bytes():
    """3/4 of physical VMEM, capped at 100 MiB (~48 MiB v7x, ~96 MiB v5e/v6e)."""
    try:
        cap = int(pltpu.get_tpu_info().vmem_capacity_bytes)
    except Exception:
        cap = 64 * 1024 * 1024        # conservative fallback: v7x physical VMEM
    return min((cap * 3) // 4, 100 * 1024 * 1024)


@functools.partial(jax.jit, static_argnames=("tile_n", "out_dtype"))
def projection_mlp(x, w1, b1, w2, b2, *, tile_n=512, out_dtype=None):
    """x: [N, in_dim]; w1: [in_dim, hidden]; b1: [hidden];
    w2: [hidden, out]; b2: [out] -> [N, out] (dtype = out_dtype or x.dtype)."""
    n, in_dim = x.shape
    hidden = w1.shape[1]
    out_dim = w2.shape[1]
    out_dtype = jnp.dtype(out_dtype) if out_dtype is not None else x.dtype

    # Clamp the batch tile to the batch; keep >= 2 grid steps when the batch
    # allows it so both v7x TensorCores get work on the "parallel" grid axis.
    tile_n = min(tile_n, _round_up8(n))
    if n > 8 and pl.cdiv(n, tile_n) < 2:
        tile_n = _round_up8(pl.cdiv(n, 2))
    n_tiles = pl.cdiv(n, tile_n)      # partial last block: output rows masked

    # MXU fast path: bf16 weights (callers should store them in bf16 already,
    # making these casts no-ops), f32 biases / accumulation.
    compute_dtype = jnp.bfloat16
    w1_c = w1.astype(compute_dtype)
    w2_c = w2.astype(compute_dtype)
    b1_2d = b1.reshape(1, hidden).astype(jnp.float32)
    b2_2d = b2.reshape(1, out_dim).astype(jnp.float32)

    cost = pl.CostEstimate(
        flops=2 * n * (in_dim * hidden + hidden * out_dim),
        transcendentals=0,
        bytes_accessed=(n * in_dim * x.dtype.itemsize                 # x (as-is)
                        + (in_dim * hidden + hidden * out_dim) * 2    # bf16 weights
                        + (hidden + out_dim) * 4                      # f32 biases
                        + n * out_dim * out_dtype.itemsize),          # y writeback
    )

    def resident(shape):
        # Constant index_map => stays in VMEM across all grid steps; Buffered(1)
        # => single buffer (no 2x VMEM for operands that never change).
        return pl.BlockSpec(shape, lambda i: (0, 0), pipeline_mode=pl.Buffered(1))

    return pl.pallas_call(
        _mlp_kernel,
        out_shape=jax.ShapeDtypeStruct((n, out_dim), out_dtype),
        grid_spec=pltpu.PrefetchScalarGridSpec(
            num_scalar_prefetch=0,
            grid=(n_tiles,),
            in_specs=[
                # x: streamed per grid step (double-buffered by the pipeline).
                pl.BlockSpec((tile_n, in_dim), lambda i: (i, 0)),
                resident((in_dim, hidden)),   # W1
                resident((1, hidden)),        # b1
                resident((hidden, out_dim)),  # W2
                resident((1, out_dim)),       # b2
            ],
            out_specs=pl.BlockSpec((tile_n, out_dim), lambda i: (i, 0)),
        ),
        compiler_params=pltpu.CompilerParams(
            dimension_semantics=("parallel",),   # batch tiles shard over v7x's 2 TCs
            vmem_limit_bytes=_vmem_limit_bytes(),
        ),
        cost_estimate=cost,
    )(x, w1_c, b1_2d, w2_c, b2_2d)


def init_params(key, in_dim, hidden_dim, out_dim, dtype=jnp.float32):
    """Deterministic PyTorch-style Linear init: U(-1/sqrt(fan_in), 1/sqrt(fan_in))."""
    k1, k2, k3, k4 = jax.random.split(key, 4)
    bound1 = 1.0 / jnp.sqrt(in_dim)
    bound2 = 1.0 / jnp.sqrt(hidden_dim)
    # Stored pre-transposed: [fan_in, fan_out].
    w1 = jax.random.uniform(k1, (in_dim, hidden_dim), dtype, -bound1, bound1)
    b1 = jax.random.uniform(k2, (hidden_dim,), dtype, -bound1, bound1)
    w2 = jax.random.uniform(k3, (hidden_dim, out_dim), dtype, -bound2, bound2)
    b2 = jax.random.uniform(k4, (out_dim,), dtype, -bound2, bound2)
    return w1, b1, w2, b2


if __name__ == "__main__":
    # Projection-head shapes: in_dim = hidden_dim = 128 (hidden_dim=None => in_dim),
    # out_dim = 256. batch = 200 deliberately NOT a multiple of the tile so the
    # masked partial last block and the >=2-grid-step heuristic are exercised.
    batch, in_dim, out_dim = 200, 128, 256
    hidden_dim = in_dim

    key = jax.random.PRNGKey(0)
    kx, kp = jax.random.split(key)
    x = jax.random.normal(kx, (batch, in_dim), jnp.float32)
    w1, b1, w2, b2 = init_params(kp, in_dim, hidden_dim, out_dim)

    # Store the weights in bf16 once (hoisted out of the per-call hot path).
    w1_b = w1.astype(jnp.bfloat16)
    w2_b = w2.astype(jnp.bfloat16)

    y = projection_mlp(x, w1_b, b1, w2_b, b2)
    jax.block_until_ready(y)
    assert y.shape == (batch, out_dim)
    assert y.dtype == x.dtype

    # Reference with the same mixed-precision recipe (bf16 matmuls, f32
    # accumulate, f32 bias add / ReLU) -> should match the kernel very tightly.
    xb = x.astype(jnp.bfloat16)
    h_ref = jnp.maximum(
        jnp.dot(xb, w1_b, preferred_element_type=jnp.float32) + b1, 0.0)
    ref = jnp.dot(h_ref.astype(jnp.bfloat16), w2_b,
                  preferred_element_type=jnp.float32) + b2
    assert jnp.allclose(y, ref, atol=1e-3, rtol=1e-3)

    # Sanity vs the full-f32 math (loose tolerance: bf16 rounding of x / h / W).
    ref_f32 = jnp.maximum(x @ w1 + b1, 0.0) @ w2 + b2
    assert jnp.allclose(y, ref_f32, atol=5e-2, rtol=5e-2)

    print("KERNEL_OK")
</pallas_src>

<mosaic_0001>
module attributes {stable_mosaic.version = 11 : i64} {
  func.func @_mlp_kernel(%arg0: i32, %arg1: memref<104x128xf32, #tpu.memory_space<vmem>>, %arg2: memref<128x128xbf16, #tpu.memory_space<vmem>>, %arg3: memref<1x128xf32, #tpu.memory_space<vmem>>, %arg4: memref<128x256xbf16, #tpu.memory_space<vmem>>, %arg5: memref<1x256xf32, #tpu.memory_space<vmem>>, %arg6: memref<104x256xf32, #tpu.memory_space<vmem>>) attributes {dimension_semantics = [#tpu.dimension_semantics<parallel>], iteration_bounds = array<i64: 2>, scalar_prefetch = 0 : i64, scratch_operands = 0 : i64, tpu.core_type = #tpu.core_type<tc>, window_params = [{transform_indices = @transform_0, window_bounds = array<i64: 104, 128>}, {pipeline_mode = #tpu.pipeline_mode<synchronous>, transform_indices = @transform_1, window_bounds = array<i64: 128, 128>}, {pipeline_mode = #tpu.pipeline_mode<synchronous>, transform_indices = @transform_2, window_bounds = array<i64: 1, 128>}, {pipeline_mode = #tpu.pipeline_mode<synchronous>, transform_indices = @transform_3, window_bounds = array<i64: 128, 256>}, {pipeline_mode = #tpu.pipeline_mode<synchronous>, transform_indices = @transform_4, window_bounds = array<i64: 1, 256>}, {transform_indices = @transform_5, window_bounds = array<i64: 104, 256>}]} {
    %c0 = arith.constant 0 : index
    %c0_0 = arith.constant 0 : index
    %0 = vector.load %arg1[%c0, %c0_0] : memref<104x128xf32, #tpu.memory_space<vmem>>, vector<104x128xf32>
    %1 = arith.truncf %0 : vector<104x128xf32> to vector<104x128xbf16>
    %c0_1 = arith.constant 0 : index
    %c0_2 = arith.constant 0 : index
    %2 = vector.load %arg2[%c0_1, %c0_2] : memref<128x128xbf16, #tpu.memory_space<vmem>>, vector<128x128xbf16>
    %cst = arith.constant dense<0.000000e+00> : vector<104x128xf32>
    %3 = tpu.matmul %1, %2, %cst {dimension_numbers = #tpu.dot_dimension_numbers<[1], [0], [0], [1], [0, 0, 1, 1], [], []>} : vector<104x128xbf16>, vector<128x128xbf16>, vector<104x128xf32> -> vector<104x128xf32>
    %c0_3 = arith.constant 0 : index
    %c0_4 = arith.constant 0 : index
    %4 = vector.load %arg3[%c0_3, %c0_4] : memref<1x128xf32, #tpu.memory_space<vmem>>, vector<1x128xf32>
    %5 = vector.broadcast %4 : vector<1x128xf32> to vector<104x128xf32>
    %6 = arith.addf %3, %5 : vector<104x128xf32>
    %cst_5 = arith.constant 0.000000e+00 : f32
    %7 = vector.broadcast %cst_5 : f32 to vector<104x128xf32>
    %8 = arith.maximumf %6, %7 : vector<104x128xf32>
    %9 = arith.truncf %8 : vector<104x128xf32> to vector<104x128xbf16>
    %c0_6 = arith.constant 0 : index
    %c0_7 = arith.constant 0 : index
    %10 = vector.load %arg4[%c0_6, %c0_7] : memref<128x256xbf16, #tpu.memory_space<vmem>>, vector<128x256xbf16>
    %cst_8 = arith.constant dense<0.000000e+00> : vector<104x256xf32>
    %11 = tpu.matmul %9, %10, %cst_8 {dimension_numbers = #tpu.dot_dimension_numbers<[1], [0], [0], [1], [0, 0, 1, 1], [], []>} : vector<104x128xbf16>, vector<128x256xbf16>, vector<104x256xf32> -> vector<104x256xf32>
    %c0_9 = arith.constant 0 : index
    %c0_10 = arith.constant 0 : index
    %12 = vector.load %arg5[%c0_9, %c0_10] : memref<1x256xf32, #tpu.memory_space<vmem>>, vector<1x256xf32>
    %13 = vector.broadcast %12 : vector<1x256xf32> to vector<104x256xf32>
    %14 = arith.addf %11, %13 : vector<104x256xf32>
    %c0_11 = arith.constant 0 : index
    %c0_12 = arith.constant 0 : index
    %15 = vector.load %arg6[%c0_11, %c0_12] : memref<104x256xf32, #tpu.memory_space<vmem>>, vector<104x256xf32>
    tpu.vector_store %arg6[%c0_11, %c0_12], %14 {strides = array<i32>} : memref<104x256xf32, #tpu.memory_space<vmem>>, vector<104x256xf32>,
    return
  }
  func.func @transform_0(%arg0: i32) -> (i32, i32) {
    %c0_i32 = arith.constant 0 : i32
    %c0_i32_0 = arith.constant 0 : i32
    return %arg0, %c0_i32 : i32, i32
  }
  func.func @transform_1(%arg0: i32) -> (i32, i32) {
    %c0_i32 = arith.constant 0 : i32
    %c0_i32_0 = arith.constant 0 : i32
    %c0_i32_1 = arith.constant 0 : i32
    return %c0_i32, %c0_i32_0 : i32, i32
  }
  func.func @transform_2(%arg0: i32) -> (i32, i32) {
    %c0_i32 = arith.constant 0 : i32
    %c0_i32_0 = arith.constant 0 : i32
    %c0_i32_1 = arith.constant 0 : i32
    return %c0_i32, %c0_i32_0 : i32, i32
  }
  func.func @transform_3(%arg0: i32) -> (i32, i32) {
    %c0_i32 = arith.constant 0 : i32
    %c0_i32_0 = arith.constant 0 : i32
    %c0_i32_1 = arith.constant 0 : i32
    return %c0_i32, %c0_i32_0 : i32, i32
  }
  func.func @transform_4(%arg0: i32) -> (i32, i32) {
    %c0_i32 = arith.constant 0 : i32
    %c0_i32_0 = arith.constant 0 : i32
    %c0_i32_1 = arith.constant 0 : i32
    return %c0_i32, %c0_i32_0 : i32, i32
  }
  func.func @transform_5(%arg0: i32) -> (i32, i32) {
    %c0_i32 = arith.constant 0 : i32
    %c0_i32_0 = arith.constant 0 : i32
    return %arg0, %c0_i32 : i32, i32
  }
}

</mosaic_0001>

<bundles_post_ra>
// kernel: projection_mlp.1
= control target key start
LH: loop header
LB: loop body
LE: loop exit
PB: predicated region body
PF: predicated region fallthrough
CT: control target
= control target key end

     0   :  { %10 = vsyncpa [#allocation3], 0  ;;  %s1585_s0 = inlined_call_operand.hbm [shape: f32[200,128], index: 0, kind: input, shape index: {}]   ;;  %s1586_s1 = inlined_call_operand.hbm [shape: bf16[128,128], index: 1, kind: input, shape index: {}]   ;;  %s1587_s2 = inlined_call_operand.vmem [shape: f32[1,128], index: 2, kind: input, shape index: {}]   ;;  %s1588_s3 = inlined_call_operand.hbm [shape: bf16[128,256], index: 3, kind: input, shape index: {}]   ;;  %s1589_s4 = inlined_call_operand.vmem [shape: f32[1,256], index: 4, kind: input, shape index: {}]   ;;  %s1590_s5 = inlined_call_operand.hbm [shape: f32[200,256], index: 5, kind: output, shape index: {}]  }
   0x1   :  { %12 = vsyncpa [#allocation3 + $0x1], 0 }
   0x2   :  { %13 = vsyncpa [#allocation6], 0 }
   0x3   :  { %14 = vsyncpa [#allocation4], 0 }
   0x4   :  { %16 = vsyncpa [#allocation4 + $0x1], 0  ;;  %s1248_s18 = smov 0   ;;  %s1250_s19 = smov 0  }
   0x5   :  { %s1252_s20 = smov 0   ;;  %s1254_s21 = smov 0  }
   0x6 LB: > { %s1269_s22 = sadd.s32 4294967295, %s1201_s21   ;;  %s838_s23 = sadd.s32 4294967294, %s1201_s21   ;;  %s1201_s21 = sphi %s1254_s21, %s1607_s21   ;;  %s1197_s20 = sphi %s1252_s20, %s1606_s20   ;;  %s1193_s19 = sphi %s1250_s19, %s1605_s19   ;;  %s1189_s18 = sphi %s1248_s18, %s1604_s18  }
   0x7   : > { %s1273_s24 = sadd.s32 1, %s1201_s21   ;;  %s29_s25 = sadd.s32 1, %s1197_s20 }
   0x8   : > { %s26_s26 = ssub.s32 %s1201_s21, %s1273_s24  ;;  %p36_p0 = scmp.ne.s32.totalorder %s1197_s20, %s1193_s19 }
   0x9   : > { %p27_p1 = scmp.eq.s32.totalorder %s26_s26, 0  ;;  %p37_p2 = scmp.eq.s32.totalorder %s1201_s21, 0 }
   0xa   : > { %p42_p3 = scmp.ne.s32.totalorder %s1193_s19, %s1189_s18  ;;  %p1591_p4 = scmp.eq.s32.totalorder %s1269_s22, 0 }
   0xb   : > { %s1285_s27 = scalar_select %p27_p1, %s1197_s20, %s29_s25  }
   0xc   : > { %p1287_p5 = por %p37_p2, %p36_p0  ;;  %p1293_p6 = por %p1591_p4, %p42_p3 }
   0xd   : > { %p150_p7 = scmp.eq.s32.totalorder %s1269_s22, 1  ;;  %p156_p8 = scmp.eq.s32.totalorder %s838_s23, 1 }
   0xe   : > { %s1594_s29 = scalar_select %p1293_p6, 1, 0 }
   0xf   : > { %p839_p9 = scmp.ge.s32.totalorder %s1201_s21, 1  ;;  %p163_p10 = scmp.lt.s32.totalorder %s1201_s21, 3 }
  0x10   : > { %p1300_p11 = por %p150_p7, %p36_p0  ;;  %p1304_p12 = por %p156_p8, %p42_p3 }
  0x11   : > { %p1308_p13 = pnand %p839_p9, %p163_p10  ;;  %s1203_s8 = smov [#allocation5]  }
  0x12   : > { %s1595_s30 = scalar_select %p1300_p11, 1, 0 }
  0x13   : > { %s1596_s6 = scalar_select %p1304_p12, 1, 0 }
  0x14   : > { %p962_p1 = pneg %p1308_p13  ;;  %s175_s9 = sshll.u32 %s1203_s8, 4  ;;  %s176_s9 = int_to_ptr.vmem [resolvable:$true] %s175_s9 }
  0x15   : > { %s1204_s11 = smov [#allocation7]   ;;  %s1066_s13 = scalar_lea.vmem %s176_s9, 1024 }
  0x16   : > { %p1316_p2 = pnand %p962_p1, %p1591_p4  ;;  %s191_s12 = sshll.u32 %s1204_s11, 4  ;;  %s192_s12 = int_to_ptr.vmem [resolvable:$true] %s191_s12 }
  0x17   : > { %p1067_p3 = scmp.ne.s32.totalorder %s176_s9, %s1066_s13  ;;  %p1074_p9 = scmp.lt.s32.totalorder %s176_s9, %s176_s9 }
  0x18   : > { %p1057_p0 = pneg %p1316_p2  ;;  %p1075_p10 = scmp.lt.s32.totalorder %s1066_s13, %s1066_s13 }
  0x1a   : > { %p1069_p7 = pnand %p1067_p3, %p1057_p0  ;;  %p1076_p12 = por %p1075_p10, %p1074_p9 }
  0x1c   : > { %p1070_p8 = pneg %p1069_p7 }
  0x1e   : > { %p1077_p1 = pnand %p1076_p12, %p1070_p8 }
  0x20   : > { %1080 = shalt.err (!%p1077_p1)
}
  0x21   : > { %s1205_s14 = smov 64   ;;  %s1206_s15 = smov 4  }
  0x22   : > { %965 = dma.hbm_to_vmem [thread:$0]  (!%p1316_p2), %s1586_s1, 1024, %s176_s9, [#allocation6], %s1205_s14, %s1205_s14, %s1206_s15  }
  0x23   : > { %s1092_s23 = scalar_lea.vmem %s192_s12, 2048  ;;  %p1100_p11 = scmp.lt.s32.totalorder %s192_s12, %s192_s12 }
  0x24   : > { %p1093_p4 = scmp.ne.s32.totalorder %s192_s12, %s1092_s23  ;;  %p1101_p6 = scmp.lt.s32.totalorder %s1092_s23, %s1092_s23 }
  0x26   : > { %p1095_p3 = pnand %p1093_p4, %p1057_p0  ;;  %p1102_p9 = por %p1101_p6, %p1100_p11 }
  0x28   : > { %p1096_p7 = pneg %p1095_p3 }
  0x2a   : > { %p1103_p12 = pnand %p1102_p9, %p1096_p7 }
  0x2c   : > { %1106 = shalt.err (!%p1103_p12)
}
  0x2d   : > { %s1207_s25 = smov 128   ;;  %s1208_s26 = smov 8  }
  0x2e   : > { %968 = dma.hbm_to_vmem [thread:$0]  (!%p1316_p2), %s1588_s3, 2048, %s192_s12, [#allocation6], %s1207_s25, %s1207_s25, %s1208_s26  }
  0x2f   : > { %p842_p8 = scmp.ge.s32.totalorder %s1201_s21, 2 }
  0x31   : > { %204 = sbr.rel (%p842_p8) target bundleno = 88 (0x58), region = 32 }
  0x36   : > { %207 = sbr.rel (!%p1287_p5) target bundleno = 88 (0x58), region = 36  ;;  %s208_s9 = sand.u32 (%p1287_p5), 1, %s1197_s20  }
  0x37   : > { %s213_s13 = smul.u32 (%p1287_p5), 13, %s1201_s21  ;;  %s1348_s16 = scalar_lea.sflag (%p1287_p5), [#allocation3], %s208_s9 }
  0x38   : > { %s949_s14 = smul.u32 (%p1287_p5), 104, %s208_s9 }
  0x39   : > { %s214_s15 = ssub.s32 (%p1287_p5), 25, %s213_s13 }
  0x3a   : > { %p215_p4 = scmp.lt.s32.totalorder (%p1287_p5), %s214_s15, 13  ;;  %s212_s17 = scalar_lea.vmem (%p1287_p5), [#allocation2], %s949_s14 }
  0x3c   : > { %s1609_s15 = smov (!%p215_p4, %s214_s15), 13 }
  0x3d   : > { %s1345_s10 = sshll.u32 %s1609_s15, 7 }
  0x3e   : > { %s219_s12 = ssub.s32 1664, %s1345_s10 }
  0x3f   : > { %220 = vsyncadd %s1348_s16, %s219_s12  ;;  %p844_p5 = scmp.ne.s32.totalorder %s1345_s10, 0  ;;  %s885_s28 = smul.u32 1664, %s1201_s21 }
  0x40   : > { %s225_s23 = sshll.u32 %s212_s17, 4  ;;  %s1111_s14 = scalar_lea.hbm %s1585_s0, 3200  ;;  %s1358_s23 = int_to_ptr.vmem [resolvable:$true] %s225_s23 }
  0x41   : > { %s1356_s8 = scalar_lea.hbm %s1585_s0, %s885_s28 }
  0x42   : > { %s1107_s11 = scalar_lea.hbm %s1356_s8, %s1345_s10  ;;  %p1112_p0 = scmp.lt.s32.totalorder %s1356_s8, %s1585_s0 }
  0x43   : > { %p1108_p6 = scmp.ne.s32.totalorder %s1356_s8, %s1107_s11  ;;  %p1113_p10 = scmp.lt.s32.totalorder %s1111_s14, %s1107_s11 }
  0x45   : > { %p1109_p11 = pnand %p1108_p6, %p844_p5  ;;  %p1114_p1 = por %p1113_p10, %p1112_p0 }
  0x47   : > { %p1110_p2 = pneg %p1109_p11 }
  0x49   : > { %p1115_p3 = pnand %p1114_p1, %p1110_p2 }
  0x4b   : > { %1118 = shalt.err (!%p1115_p3)
}
  0x4c   : > { %s1119_s17 = scalar_lea.vmem %s1358_s23, %s1345_s10  ;;  %s1209_s28 = smov [#allocation2]  }
  0x4d   : > { %p1120_p7 = scmp.ne.s32.totalorder %s1358_s23, %s1119_s17  ;;  %s1123_s25 = sshll.u32 %s1209_s28, 4  ;;  %s1124_s25 = int_to_ptr.vmem [resolvable:$false] %s1123_s25 }
  0x4e   : > { %s1125_s26 = scalar_lea.vmem %s1124_s25, 3328  ;;  %p1126_p4 = scmp.lt.s32.totalorder %s1358_s23, %s1124_s25 }
  0x4f   : > { %p1121_p9 = pnand %p1120_p7, %p844_p5  ;;  %p1127_p6 = scmp.lt.s32.totalorder %s1125_s26, %s1119_s17 }
  0x51   : > { %p1122_p12 = pneg %p1121_p9  ;;  %p1128_p11 = por %p1127_p6, %p1126_p4 }
  0x53   : > { %p1129_p0 = pnand %p1128_p11, %p1122_p12 }
  0x55   : > { %1132 = shalt.err (!%p1129_p0)
}
  0x56   : > { %s1210_s11 = smov 128   ;;  %s1211_s9 = smov 8  }
  0x57   : > { %231 = dma.hbm_to_vmem [thread:$0]  (%p844_p5), %s1356_s8, %s1345_s10, %s1358_s23, %s1348_s16, %s1210_s11, %s1210_s11, %s1211_s9  }
  0x58 PF: > { %237 = sbr.rel (%p1308_p13) target bundleno = 607 (0x25f), region = 40  ;;  %s1387_s13 = sand.u32 (!%p1308_p13), 1, %s1193_s19  }
  0x59   : > { %s950_s14 = smul.u32 (!%p1308_p13), 104, %s1387_s13  ;;  %s240_s15 = scalar_lea.sflag (!%p1308_p13), [#allocation3], %s1387_s13 }
  0x5a   : > { %p1599_p2 = scmp.ne.s32.totalorder (!%p1308_p13), %s1594_s29, 0 }
  0x5b   : > { %s1391_s12 = scalar_lea.vmem (!%p1308_p13), [#allocation2], %s950_s14 }
  0x5d   : > { %1176 = dma.done.wait (%p1599_p2), %s240_s15, 1664  }
  0x5e   : > { %1178 = vsyncadd (%p1599_p2), %s240_s15, 4294965632  ;;  %p1600_p5 = scmp.eq.s32.totalorder %s1269_s22, 0 }
  0x60   : > { %1180 = dma.done.wait (%p1600_p5), [#allocation6], 3072   ;;  %p1601_p13 = pmov %p1600_p5 }
  0x61   : > { %v1212_v0 = vmov 0.0   ;;  %vm1213_vm0 = vmmov 0   ;;  %v1023_v1 = vld [vmem:[#allocation5 + $0x38] sm:$0xff]   ;;  %v1024_v2 = vld [vmem:[#allocation5 + $0x30] sm:$0xff]   ;;  %v1025_v3 = vld [vmem:[#allocation5 + $0x28] sm:$0xff]   ;;  %v1214_v45 = vmov 0  }
  0x62   : > { %1182 = vsyncadd (%p1601_p13), [#allocation6], 4294964224  ;;  %905 = vmatprep.subr.bf16.mxu0 %v1212_v0  ;;  %921 = vmatprep.mubr.msk.bf16.mxu0 %vm1213_vm0, %v1212_v0  ;;  %v1026_v4 = vld [vmem:[#allocation5 + $0x20] sm:$0xff]   ;;  %v1031_v5 = vld [vmem:[#allocation7 + $0x74] ss:$8 sps:$4 sm:$0xff]   ;;  %s951_s23 = smul.u32 208, %s1387_s13 }
  0x63   : > { %906 = vmatpush3.bf16.msra.mxu0 %v1023_v1  ;;  %v1033_v6 = vld [vmem:[#allocation7 + $0x70] ss:$8 sps:$4 sm:$0xff]   ;;  %v1034_v8 = vld [vmem:[#allocation7 + $0x64] ss:$8 sps:$4 sm:$0xff]   ;;  %597 = vmatprep.subr.bf16.mxu1 %v1031_v5  ;;  %v1036_v9 = vld [vmem:[#allocation7 + $0x60] ss:$8 sps:$4 sm:$0xff]  }
  0x64   : > { %907 = vmatprep.subr.bf16.mxu0 %v1212_v0  ;;  %v1027_v7 = vld [vmem:[#allocation5 + $0x18] sm:$0xff]   ;;  %598 = vmatpush1.bf16.msra.mxu1 %v1033_v6  ;;  %v1028_v11 = vld [vmem:[#allocation5 + $0x10] sm:$0xff]   ;;  %v1040_v13 = vld [vmem:[#allocation7 + $0x44] ss:$8 sps:$4 sm:$0xff]   ;;  %s1470_s8 = scalar_lea.vmem [#allocation8], %s951_s23  ;;  %s725_s17 = scalar_lea.sflag [#allocation4], %s1387_s13 }
  0x65   : > { %599 = vmatprep.subr.bf16.mxu1 %v1034_v8  ;;  %v1037_v10 = vld [vmem:[#allocation7 + $0x54] ss:$8 sps:$4 sm:$0xff]   ;;  %v1039_v12 = vld [vmem:[#allocation7 + $0x50] ss:$8 sps:$4 sm:$0xff]   ;;  %v1029_v14 = vld [vmem:[#allocation5 + $0x8] sm:$0xff]   ;;  %629 = vmatprep.mubr.bf16.mxu1 %v1214_v45  ;;  %p1602_p10 = scmp.ne.s32.totalorder %s1595_s30, 0 }
  0x66   : > { %v1042_v15 = vld [vmem:[#allocation7 + $0x40] ss:$8 sps:$4 sm:$0xff]   ;;  %v1043_v16 = vld [vmem:[#allocation7 + $0x34] ss:$8 sps:$4 sm:$0xff]   ;;  %v1045_v20 = vld [vmem:[#allocation7 + $0x30] ss:$8 sps:$4 sm:$0xff]  }
  0x67   : > { %908 = vmatpush3.bf16.msra.mxu0 %v1024_v2  ;;  %v1030_v17 = vld [vmem:[#allocation5] sm:$0xff]   ;;  %v290_v18 = vld [vmem:[%s1391_s12] sm:$0xff]  ;;  %v293_v24 = vld [vmem:[%s1391_s12 + $0x18] sm:$0xff]  ;;  %s732_s28 = smul.u32 (%p1602_p10), 13, %s1269_s22 }
  0x68   : > { %909 = vmatprep.subr.bf16.mxu0 %v1212_v0  ;;  %600 = vmatpush1.bf16.msra.mxu1 %v1036_v9  ;;  %v291_v19 = vld [vmem:[%s1391_s12 + $0x8] sm:$0xff]  ;;  %v292_v23 = vld [vmem:[%s1391_s12 + $0x10] sm:$0xff]  ;;  %v294_v26 = vld [vmem:[%s1391_s12 + $0x20] sm:$0xff] }
  0x69   : > { %601 = vmatprep.subr.bf16.mxu1 %v1037_v10  ;;  %v303_v21 = vpack.c.bf16 %v291_v19, %v290_v18  ;;  %v1046_v22 = vld [vmem:[#allocation7 + $0x24] ss:$8 sps:$4 sm:$0xff]   ;;  %v304_v25 = vpack.c.bf16 %v293_v24, %v292_v23  ;;  %v298_v32 = vld [vmem:[%s1391_s12 + $0x40] sm:$0xff]  ;;  %v1048_v40 = vld [vmem:[#allocation7 + $0x20] ss:$8 sps:$4 sm:$0xff]   ;;  %s733_s25 = ssub.s32 (%p1602_p10), 25, %s732_s28 }
  0x6a   : > { %v295_v27 = vld [vmem:[%s1391_s12 + $0x28] sm:$0xff]  ;;  %v296_v29 = vld [vmem:[%s1391_s12 + $0x30] sm:$0xff]  ;;  %v297_v30 = vld [vmem:[%s1391_s12 + $0x38] sm:$0xff]  ;;  %p734_p1 = scmp.lt.s32.totalorder (%p1602_p10), %s733_s25, 13 }
  0x6b   : > { %910 = vmatpush3.bf16.msra.mxu0 %v1025_v3  ;;  %v305_v28 = vpack.c.bf16 %v295_v27, %v294_v26  ;;  %v306_v31 = vpack.c.bf16 %v297_v30, %v296_v29  ;;  %v299_v33 = vld [vmem:[%s1391_s12 + $0x48] sm:$0xff]  ;;  %v300_v35 = vld [vmem:[%s1391_s12 + $0x50] sm:$0xff]  ;;  %v301_v36 = vld [vmem:[%s1391_s12 + $0x58] sm:$0xff] }
  0x6c   : > { %911 = vmatprep.subr.bf16.mxu0 %v1212_v0  ;;  %602 = vmatpush1.bf16.msra.mxu1 %v1039_v12  ;;  %v307_v34 = vpack.c.bf16 %v299_v33, %v298_v32  ;;  %v308_v37 = vpack.c.bf16 %v301_v36, %v300_v35  ;;  %v302_v38 = vld [vmem:[%s1391_s12 + $0x60] sm:$0xff]  ;;  %v1052_v43 = vld [vmem:[#allocation7 + $0x4] ss:$8 sps:$4 sm:$0xff]   ;;  %v1054_v44 = vld [vmem:[#allocation7] ss:$8 sps:$4 sm:$0xff]  }
  0x6d   : > { %603 = vmatprep.subr.bf16.mxu1 %v1040_v13  ;;  %v309_v39 = vpack.c.bf16 %v302_v38, %v302_v38  ;;  %v1049_v41 = vld [vmem:[#allocation7 + $0x14] ss:$8 sps:$4 sm:$0xff]   ;;  %v1051_v42 = vld [vmem:[#allocation7 + $0x10] ss:$8 sps:$4 sm:$0xff]  }
  0x6e   : > { %v1440_v46 = vld [vmem:[%s1587_s2] ss:$0 sm:$0xff] }
  0x6f   : > { %912 = vmatpush3.bf16.msra.mxu0 %v1026_v4 }
  0x70   : > { %913 = vmatprep.subr.bf16.mxu0 %v1212_v0  ;;  %604 = vmatpush1.bf16.msra.mxu1 %v1042_v15 }
  0x71   : > { %605 = vmatprep.subr.bf16.mxu1 %v1043_v16 }
  0x73   : > { %914 = vmatpush3.bf16.msra.mxu0 %v1027_v7 }
  0x74   : > { %915 = vmatprep.subr.bf16.mxu0 %v1212_v0  ;;  %606 = vmatpush1.bf16.msra.mxu1 %v1045_v20 }
  0x75   : > { %607 = vmatprep.subr.bf16.mxu1 %v1046_v22 }
  0x77   : > { %916 = vmatpush3.bf16.msra.mxu0 %v1028_v11 }
  0x78   : > { %917 = vmatprep.subr.bf16.mxu0 %v1212_v0  ;;  %608 = vmatpush1.bf16.msra.mxu1 %v1048_v40 }
  0x79   : > { %609 = vmatprep.subr.bf16.mxu1 %v1049_v41 }
  0x7b   : > { %918 = vmatpush3.bf16.msra.mxu0 %v1029_v14 }
  0x7c   : > { %919 = vmatprep.subr.bf16.mxu0 %v1212_v0  ;;  %610 = vmatpush1.bf16.msra.mxu1 %v1051_v42 }
  0x7d   : > { %611 = vmatprep.subr.bf16.mxu1 %v1052_v43 }
  0x7f   : > { %920 = vmatpush3.bf16.msra.mxu0 %v1030_v17 }
  0x80   : > { %612 = vmatpush1.bf16.msra.mxu1 %v1054_v44  ;;  %v507_v44 = vlaneseq }
  0x82   : > { %922 = vmatmul.mubr.bf16.vlgmr.msra.gmra.mxu0 %v303_v21 }
  0x83   : > { %925 = vmatprep.mubr.msk.bf16.mxu0 %vm1213_vm0, %v1212_v0 }
  0x8a   : > { %926 = vmatmul.mubr.bf16.gmra.mxu0 %v304_v25 }
  0x8b   : > { %929 = vmatprep.mubr.msk.bf16.mxu0 %vm1213_vm0, %v1212_v0 }
  0x92   : > { %930 = vmatmul.mubr.bf16.gmra.mxu0 %v305_v28 }
  0x93   : > { %933 = vmatprep.mubr.msk.bf16.mxu0 %vm1213_vm0, %v1212_v0 }
  0x9a   : > { %934 = vmatmul.mubr.bf16.gmra.mxu0 %v306_v31 }
  0x9b   : > { %937 = vmatprep.mubr.msk.bf16.mxu0 %vm1213_vm0, %v1212_v0 }
  0xa2   : > { %938 = vmatmul.mubr.bf16.gmra.mxu0 %v307_v34 }
  0xa3   : > { %941 = vmatprep.mubr.msk.bf16.mxu0 %vm1213_vm0, %v1212_v0 }
  0xaa   : > { %942 = vmatmul.mubr.bf16.gmra.mxu0 %v308_v37 }
  0xab   : > { %945 = vmatprep.mubr.msk.bf16.mxu0 %vm1213_vm0, %v1212_v0 }
  0xb2   : > { %946 = vmatmul.mubr.bf16.gmra.mxu0 %v309_v39 }
 0x142   : > { %v415_v47 = vpop.f32.mrf.mxu0 }
 0x143   : > { %v416_v49 = vadd.f32 %v1440_v46, %v415_v47  ;;  %v508_v47 = vshrl.u32 %v507_v44, 7 }
 0x144   : > { %v923_v48 = vpop.f32.mrf.mxu0 }
 0x145   : > { %v469_v53 = vmax.f32 %v416_v49, 0.0  ;;  %v509_v48 = vsub.s32 0, %v508_v47  ;;  %v505_v49 = vld [vmem:[%s1589_s4] sm:$0x3] }
 0x146   : > { %v418_v50 = vpop.f32.mrf.mxu0 }
 0x147   : > { %v419_v51 = vadd.f32 %v1440_v46, %v418_v50  ;;  %v513_v50 = vsub.s32 1, %v508_v47 }
 0x148   : > { %v924_v52 = vpop.f32.mrf.mxu0 }
 0x149   : > { %v470_v54 = vmax.f32 %v419_v51, 0.0  ;;  %v1465_v51 = vrot.slane %v505_v49, %v509_v48 }
 0x14a   : > { %v423_v55 = vpop.f32.mrf.mxu0 }
 0x14b   : > { %v482_v56 = vpack.c.bf16 %v470_v54, %v469_v53  ;;  %v424_v58 = vadd.f32 %v1440_v46, %v423_v55 }
 0x14c   : > { %v927_v57 = vpop.f32.mrf.mxu0 }
 0x14d   : > { %630 = vmatmul.mubr.bf16.vlgmr.msra.gmra.mxu1 %v482_v56  ;;  %v471_v62 = vmax.f32 %v424_v58, 0.0 }
 0x14e   : > { %v426_v59 = vpop.f32.mrf.mxu0  ;;  %639 = vmatprep.mubr.bf16.mxu1 %v1214_v45 }
 0x14f   : > { %v427_v60 = vadd.f32 %v1440_v46, %v426_v59 }
 0x150   : > { %v928_v61 = vpop.f32.mrf.mxu0 }
 0x151   : > { %v472_v63 = vmax.f32 %v427_v60, 0.0 }
 0x152   : > { %v431_v0 = vpop.f32.mrf.mxu0 }
 0x153   : > { %v483_v1 = vpack.c.bf16 %v472_v63, %v471_v62  ;;  %v432_v3 = vadd.f32 %v1440_v46, %v431_v0 }
 0x154   : > { %v931_v2 = vpop.f32.mrf.mxu0 }
 0x155   : > { %640 = vmatmul.mubr.bf16.gmra.mxu1 %v483_v1  ;;  %v473_v7 = vmax.f32 %v432_v3, 0.0 }
 0x156   : > { %v434_v4 = vpop.f32.mrf.mxu0  ;;  %649 = vmatprep.mubr.bf16.mxu1 %v1214_v45 }
 0x157   : > { %v435_v5 = vadd.f32 %v1440_v46, %v434_v4 }
 0x158   : > { %v932_v6 = vpop.f32.mrf.mxu0 }
 0x159   : > { %v474_v8 = vmax.f32 %v435_v5, 0.0 }
 0x15a   : > { %v439_v9 = vpop.f32.mrf.mxu0 }
 0x15b   : > { %v484_v10 = vpack.c.bf16 %v474_v8, %v473_v7  ;;  %v440_v12 = vadd.f32 %v1440_v46, %v439_v9 }
 0x15c   : > { %v935_v11 = vpop.f32.mrf.mxu0 }
 0x15d   : > { %650 = vmatmul.mubr.bf16.gmra.mxu1 %v484_v10  ;;  %v475_v16 = vmax.f32 %v440_v12, 0.0 }
 0x15e   : > { %v442_v13 = vpop.f32.mrf.mxu0  ;;  %659 = vmatprep.mubr.bf16.mxu1 %v1214_v45 }
 0x15f   : > { %v443_v14 = vadd.f32 %v1440_v46, %v442_v13 }
 0x160   : > { %v936_v15 = vpop.f32.mrf.mxu0 }
 0x161   : > { %v476_v17 = vmax.f32 %v443_v14, 0.0 }
 0x162   : > { %v447_v18 = vpop.f32.mrf.mxu0 }
 0x163   : > { %v485_v19 = vpack.c.bf16 %v476_v17, %v475_v16  ;;  %v448_v21 = vadd.f32 %v1440_v46, %v447_v18 }
 0x164   : > { %v939_v20 = vpop.f32.mrf.mxu0 }
 0x165   : > { %660 = vmatmul.mubr.bf16.gmra.mxu1 %v485_v19  ;;  %v477_v25 = vmax.f32 %v448_v21, 0.0 }
 0x166   : > { %v450_v22 = vpop.f32.mrf.mxu0  ;;  %669 = vmatprep.mubr.bf16.mxu1 %v1214_v45 }
 0x167   : > { %v451_v23 = vadd.f32 %v1440_v46, %v450_v22 }
 0x168   : > { %v940_v24 = vpop.f32.mrf.mxu0 }
 0x169   : > { %v478_v26 = vmax.f32 %v451_v23, 0.0 }
 0x16a   : > { %v455_v27 = vpop.f32.mrf.mxu0 }
 0x16b   : > { %v486_v28 = vpack.c.bf16 %v478_v26, %v477_v25  ;;  %v456_v30 = vadd.f32 %v1440_v46, %v455_v27 }
 0x16c   : > { %v943_v29 = vpop.f32.mrf.mxu0 }
 0x16d   : > { %670 = vmatmul.mubr.bf16.gmra.mxu1 %v486_v28  ;;  %v479_v34 = vmax.f32 %v456_v30, 0.0 }
 0x16e   : > { %v458_v31 = vpop.f32.mrf.mxu0  ;;  %679 = vmatprep.mubr.bf16.mxu1 %v1214_v45 }
 0x16f   : > { %v459_v32 = vadd.f32 %v1440_v46, %v458_v31 }
 0x170   : > { %v944_v33 = vpop.f32.mrf.mxu0 }
 0x171   : > { %v480_v35 = vmax.f32 %v459_v32, 0.0 }
 0x172   : > { %v463_v36 = vpop.f32.mrf.mxu0 }
 0x173   : > { %v487_v37 = vpack.c.bf16 %v480_v35, %v479_v34  ;;  %v464_v38 = vadd.f32 %v1440_v46, %v463_v36  ;;  %v1467_v46 = vrot.slane %v505_v49, %v513_v50 }
 0x174   : > { %v947_v39 = vpop.f32.mrf.mxu0 }
 0x175   : > { %v481_v40 = vmax.f32 %v464_v38, 0.0  ;;  %680 = vmatmul.mubr.bf16.gmra.mxu1 %v487_v37 }
 0x176   : > { %v466_v41 = vpop.f32.mrf.mxu0  ;;  %689 = vmatprep.mubr.bf16.mxu1 %v1214_v45 }
 0x177   : > { %v488_v43 = vpack.c.bf16 %v481_v40, %v481_v40 }
 0x178   : > { %v948_v42 = vpop.f32.mrf.mxu0 }
 0x17d   : > { %690 = vmatmul.mubr.bf16.gmra.mxu1 %v488_v43 }
 0x20d   : > { %v631_v52 = vpop.f32.mrf.mxu1 }
 0x20e   : > { %v632_v53 = vadd.f32 %v631_v52, %v1465_v51 }
 0x20f   : > { %v633_v45 = vpop.f32.mrf.mxu1 }
 0x210   : > { %698 = vst [vmem:[%s1470_s8] sm:$0xff] %v632_v53  ;;  %v634_v54 = vadd.f32 %v633_v45, %v1467_v46 }
 0x211   : > { %v635_v55 = vpop.f32.mrf.mxu1 }
 0x212   : > { %699 = vst [vmem:[%s1470_s8 + $0x8] sm:$0xff] %v634_v54  ;;  %v636_v56 = vadd.f32 %v635_v55, %v1465_v51 }
 0x213   : > { %v637_v57 = vpop.f32.mrf.mxu1 }
 0x214   : > { %700 = vst [vmem:[%s1470_s8 + $0x10] sm:$0xff] %v636_v56  ;;  %v638_v58 = vadd.f32 %v637_v57, %v1467_v46 }
 0x215   : > { %v641_v59 = vpop.f32.mrf.mxu1 }
 0x216   : > { %701 = vst [vmem:[%s1470_s8 + $0x18] sm:$0xff] %v638_v58  ;;  %v642_v60 = vadd.f32 %v641_v59, %v1465_v51 }
 0x217   : > { %v643_v61 = vpop.f32.mrf.mxu1 }
 0x218   : > { %702 = vst [vmem:[%s1470_s8 + $0x20] sm:$0xff] %v642_v60  ;;  %v644_v62 = vadd.f32 %v643_v61, %v1467_v46 }
 0x219   : > { %v645_v63 = vpop.f32.mrf.mxu1 }
 0x21a   : > { %703 = vst [vmem:[%s1470_s8 + $0x28] sm:$0xff] %v644_v62  ;;  %v646_v0 = vadd.f32 %v645_v63, %v1465_v51 }
 0x21b   : > { %v647_v1 = vpop.f32.mrf.mxu1 }
 0x21c   : > { %704 = vst [vmem:[%s1470_s8 + $0x30] sm:$0xff] %v646_v0  ;;  %v648_v2 = vadd.f32 %v647_v1, %v1467_v46 }
 0x21d   : > { %v651_v3 = vpop.f32.mrf.mxu1 }
 0x21e   : > { %705 = vst [vmem:[%s1470_s8 + $0x38] sm:$0xff] %v648_v2  ;;  %v652_v4 = vadd.f32 %v651_v3, %v1465_v51 }
 0x21f   : > { %v653_v5 = vpop.f32.mrf.mxu1 }
 0x220   : > { %706 = vst [vmem:[%s1470_s8 + $0x40] sm:$0xff] %v652_v4  ;;  %v654_v6 = vadd.f32 %v653_v5, %v1467_v46 }
 0x221   : > { %v655_v7 = vpop.f32.mrf.mxu1 }
 0x222   : > { %707 = vst [vmem:[%s1470_s8 + $0x48] sm:$0xff] %v654_v6  ;;  %v656_v8 = vadd.f32 %v655_v7, %v1465_v51 }
 0x223   : > { %v657_v9 = vpop.f32.mrf.mxu1 }
 0x224   : > { %708 = vst [vmem:[%s1470_s8 + $0x50] sm:$0xff] %v656_v8  ;;  %v658_v10 = vadd.f32 %v657_v9, %v1467_v46 }
 0x225   : > { %v661_v11 = vpop.f32.mrf.mxu1 }
 0x226   : > { %709 = vst [vmem:[%s1470_s8 + $0x58] sm:$0xff] %v658_v10  ;;  %v662_v12 = vadd.f32 %v661_v11, %v1465_v51 }
 0x227   : > { %v663_v13 = vpop.f32.mrf.mxu1 }
 0x228   : > { %710 = vst [vmem:[%s1470_s8 + $0x60] sm:$0xff] %v662_v12  ;;  %v664_v14 = vadd.f32 %v663_v13, %v1467_v46 }
 0x229   : > { %v665_v15 = vpop.f32.mrf.mxu1 }
 0x22a   : > { %711 = vst [vmem:[%s1470_s8 + $0x68] sm:$0xff] %v664_v14  ;;  %v666_v16 = vadd.f32 %v665_v15, %v1465_v51 }
 0x22b   : > { %v667_v17 = vpop.f32.mrf.mxu1 }
 0x22c   : > { %712 = vst [vmem:[%s1470_s8 + $0x70] sm:$0xff] %v666_v16  ;;  %v668_v18 = vadd.f32 %v667_v17, %v1467_v46 }
 0x22d   : > { %v671_v19 = vpop.f32.mrf.mxu1 }
 0x22e   : > { %713 = vst [vmem:[%s1470_s8 + $0x78] sm:$0xff] %v668_v18  ;;  %v672_v20 = vadd.f32 %v671_v19, %v1465_v51 }
 0x22f   : > { %v673_v21 = vpop.f32.mrf.mxu1 }
 0x230   : > { %714 = vst [vmem:[%s1470_s8 + $0x80] sm:$0xff] %v672_v20  ;;  %v674_v22 = vadd.f32 %v673_v21, %v1467_v46 }
 0x231   : > { %v675_v23 = vpop.f32.mrf.mxu1 }
 0x232   : > { %715 = vst [vmem:[%s1470_s8 + $0x88] sm:$0xff] %v674_v22  ;;  %v676_v24 = vadd.f32 %v675_v23, %v1465_v51 }
 0x233   : > { %v677_v25 = vpop.f32.mrf.mxu1 }
 0x234   : > { %716 = vst [vmem:[%s1470_s8 + $0x90] sm:$0xff] %v676_v24  ;;  %v678_v26 = vadd.f32 %v677_v25, %v1467_v46 }
 0x235   : > { %v681_v27 = vpop.f32.mrf.mxu1 }
 0x236   : > { %717 = vst [vmem:[%s1470_s8 + $0x98] sm:$0xff] %v678_v26  ;;  %v682_v28 = vadd.f32 %v681_v27, %v1465_v51 }
 0x237   : > { %v683_v29 = vpop.f32.mrf.mxu1 }
 0x238   : > { %718 = vst [vmem:[%s1470_s8 + $0xa0] sm:$0xff] %v682_v28  ;;  %v684_v30 = vadd.f32 %v683_v29, %v1467_v46 }
 0x239   : > { %v685_v31 = vpop.f32.mrf.mxu1 }
 0x23a   : > { %719 = vst [vmem:[%s1470_s8 + $0xa8] sm:$0xff] %v684_v30  ;;  %v686_v32 = vadd.f32 %v685_v31, %v1465_v51 }
 0x23b   : > { %v687_v33 = vpop.f32.mrf.mxu1 }
 0x23c   : > { %720 = vst [vmem:[%s1470_s8 + $0xb0] sm:$0xff] %v686_v32  ;;  %v688_v34 = vadd.f32 %v687_v33, %v1467_v46 }
 0x23d   : > { %v691_v35 = vpop.f32.mrf.mxu1 }
 0x23e   : > { %721 = vst [vmem:[%s1470_s8 + $0xb8] sm:$0xff] %v688_v34  ;;  %v692_v36 = vadd.f32 %v691_v35, %v1465_v51 }
 0x23f   : > { %v693_v37 = vpop.f32.mrf.mxu1  ;;  %731 = sbr.rel (!%p1602_p10) target bundleno = 607 (0x25f), region = 56 }
 0x240   : > { %722 = vst [vmem:[%s1470_s8 + $0xc0] sm:$0xff] %v692_v36  ;;  %v694_v38 = vadd.f32 %v693_v37, %v1467_v46 }
 0x241   : > { %v695_v39 = vpop.f32.mrf.mxu1 }
 0x242   : > { %723 = vst [vmem:[%s1470_s8 + $0xc8] sm:$0xff] %v694_v38 }
 0x243   : > { %v696_v40 = vpop.f32.mrf.mxu1 }
 0x244   : > { %s1611_s25 = smov (!%p734_p1, %s733_s25), 13 }
 0x245   : > { %s1527_s26 = sshll.u32 %s1611_s25, 8 }
 0x246   : > { %s739_s11 = ssub.s32 3328, %s1527_s26 }
 0x247   : > { %740 = vsyncadd %s725_s17, %s739_s11  ;;  %p878_p3 = scmp.ne.s32.totalorder %s1527_s26, 0  ;;  %s889_s30 = smul.u32 3328, %s1269_s22 }
 0x248   : > { %s746_s9 = sshll.u32 %s1470_s8, 4  ;;  %s1215_s7 = smov [#allocation8]   ;;  %s1540_s9 = int_to_ptr.vmem [resolvable:$true] %s746_s9 }
 0x249   : > { %s1538_s12 = scalar_lea.hbm %s1590_s5, %s889_s30  ;;  %s1133_s29 = scalar_lea.vmem %s1540_s9, %s1527_s26 }
 0x24a   : > { %p1134_p7 = scmp.ne.s32.totalorder %s1540_s9, %s1133_s29  ;;  %s1137_s10 = sshll.u32 %s1215_s7, 4  ;;  %s1138_s10 = int_to_ptr.vmem [resolvable:$false] %s1137_s10 }
 0x24b   : > { %s1139_s22 = scalar_lea.vmem %s1138_s10, 6656  ;;  %p1140_p4 = scmp.lt.s32.totalorder %s1540_s9, %s1138_s10 }
 0x24c   : > { %p1135_p9 = pnand %p1134_p7, %p878_p3  ;;  %p1141_p6 = scmp.lt.s32.totalorder %s1139_s22, %s1133_s29 }
 0x24e   : > { %p1136_p12 = pneg %p1135_p9  ;;  %p1142_p11 = por %p1141_p6, %p1140_p4 }
 0x250   : > { %p1143_p0 = pnand %p1142_p11, %p1136_p12 }
 0x252   : > { %1146 = shalt.err (!%p1143_p0)
}
 0x253   : > { %s1147_s16 = scalar_lea.hbm %s1538_s12, %s1527_s26  ;;  %s1151_s28 = scalar_lea.hbm %s1590_s5, 6400 }
 0x254   : > { %p1148_p2 = scmp.ne.s32.totalorder %s1538_s12, %s1147_s16  ;;  %p1152_p10 = scmp.lt.s32.totalorder %s1538_s12, %s1590_s5 }
 0x255   : > { %p1153_p1 = scmp.lt.s32.totalorder %s1151_s28, %s1147_s16 }
 0x256   : > { %p1149_p5 = pnand %p1148_p2, %p878_p3 }
 0x257   : > { %p1154_p7 = por %p1153_p1, %p1152_p10 }
 0x258   : > { %p1150_p13 = pneg %p1149_p5 }
 0x25a   : > { %p1155_p9 = pnand %p1154_p7, %p1150_p13 }
 0x25c   : > { %1158 = shalt.err (!%p1155_p9)
}
 0x25d   : > { %s1216_s30 = smov 256   ;;  %s1217_s14 = smov 16  }
 0x25e   : > { %752 = dma.vmem_to_hbm [thread:$0]  (%p878_p3), %s1540_s9, %s1527_s26, %s1538_s12, %s725_s17, %s1216_s30, %s1216_s30, %s1217_s14  }
 0x25f PF: > { %s761_s15 = sand.u32 1, %s1189_s18   ;;  %p1603_p12 = scmp.ne.s32.totalorder %s1596_s6, 0 }
 0x260   : > { %s762_s29 = scalar_lea.sflag [#allocation4], %s761_s15 }
 0x261   : > { %p970_p4 = pnand %p842_p8, %p1603_p12 }
 0x263   : > { %p971_p6 = pneg %p970_p4 }
 0x265   : > { %1184 = dma.done.wait (%p971_p6), %s762_s29, 3328  }
 0x266   : > { %1186 = vsyncadd (%p971_p6), %s762_s29, 4294963968  ;;  %p19_p11 = scmp.ge.s32.totalorder %s1273_s24, 4   ;;  %s1604_s18 = smov %s1193_s19 }
 0x267   : > { %s1605_s19 = smov %s1197_s20  ;;  %s1606_s20 = smov %s1285_s27 }
 0x268   : > { %s1607_s21 = smov %s1273_s24  ;;  %21 = sbr.rel (!%p19_p11) target bundleno = 6 (0x6), region = 93 }
 0x26d   :  { %767 = vsyncpa [#allocation3], 1 }
 0x26e   :  { %769 = vsyncpa [#allocation3 + $0x1], 1 }
 0x26f   :  { %770 = vsyncpa [#allocation6], 1 }
 0x270   :  { %771 = vsyncpa [#allocation4], 1 }
 0x271   :  { %773 = vsyncpa [#allocation4 + $0x1], 1 }

</bundles_post_ra>
